<compile_context>
chip_gen: v5e
topology: v5e:2x2
jax: 0.10.0
libtpu: 0.0.40
codegen_flags: <defaults>
</compile_context>

<pallas_src>
import jax
import jax.numpy as jnp
import numpy as np
from jax.experimental import pallas as pl
from jax.experimental.pallas import tpu as pltpu

# ----------------------------- static config ---------------------------------
D_MODEL = 32          # cfg.arch.gtrxl.d_model
N_HEAD = 2            # cfg.arch.gtrxl.n_head
D_HEAD = 16           # cfg.arch.gtrxl.d_inner (per-head dim)
HD = N_HEAD * D_HEAD  # 32 (== D_MODEL for this config; slab packing uses one width)
T = 8                 # query length
TM = 8                # memory length
K_LEN = T + TM        # 16 key length
R_LEN = K_LEN         # relative-position length
B = 2                 # batch
PRE_LNORM = True
LN_EPS = 1e-5
SCALE = 1.0 / (D_HEAD ** 0.5)
D_PAD = 128           # lane-dense output width
NEG_BIAS = -1e30      # additive mask bias (exp underflows to exactly 0)

# ---- slab32 row layout (width = D_MODEL = HD = 32; sections 8-row aligned) ----
R_POS = 0                         # (T*R, D)  pos_emb rows pre-gathered in rel-shift order
R_WQ = R_POS + T * R_LEN          # (D, HD)   Wq * SCALE
R_WK = R_WQ + D_MODEL             # (D, HD)
R_WV = R_WK + D_MODEL             # (D, HD)
R_WR = R_WV + D_MODEL             # (D, HD)
R_MISC = R_WR + D_MODEL           # 8 rows: 0 rwb*SCALE, 1 rrb*SCALE, 2 gamma, 3 beta
R_MASK = R_MISC + 8               # (2T, K)  additive mask bias in lanes [0:K_LEN]
R_QBLK = R_MASK + 2 * T           # (2T, HD) block-diag head mask for q
R_KVBLK = R_QBLK + 2 * T          # (2K, HD) block-diag head mask for k / v
SLAB32_ROWS = R_KVBLK + 2 * K_LEN  # 328

# ---- slab128 row layout (width = 128) ----
R_WOUT = 0                        # (HD, 128)  Wout zero-padded to 128 lanes
R_BLK2 = R_WOUT + HD              # (2T, T*R)  block-diagonal pick selector
R_GSUMT = R_BLK2 + 2 * T          # (R,  T*R)  group-sum selector (transposed, lane-dense)
SLAB128_ROWS = R_GSUMT + R_LEN    # 64


# ----------------------------- kernel helpers ---------------------------------
def _dot(a, b):
    # (m, k) @ (k, n) -> (m, n), f32 accumulation on the MXU
    return jax.lax.dot_general(a, b, (((1,), (0,)), ((), ())),
                               preferred_element_type=jnp.float32)


def _dot_nt(a, b):
    # (m, k) @ (n, k)^T -> (m, n)
    return jax.lax.dot_general(a, b, (((1,), (1,)), ((), ())),
                               preferred_element_type=jnp.float32)


def _layer_norm(x, gamma, beta):
    mu = jnp.mean(x, axis=-1, keepdims=True)
    var = jnp.mean((x - mu) ** 2, axis=-1, keepdims=True)
    return (x - mu) * jax.lax.rsqrt(var + LN_EPS) * gamma + beta


# --------------------------------- kernel -------------------------------------
def _mha_xl_kernel(x_ref, c32_ref, c128_ref, o_ref):
    # x_ref   : (K_LEN, D)   rows = [mems ; inpts] for this batch (grid axis b)
    # c32_ref : (328, 32)    coalesced width-32 slab (layout above)
    # c128_ref: (64, 128)    coalesced width-128 slab (Wout + selectors)
    x = x_ref[...]

    misc = c32_ref[R_MISC:R_MISC + 8, :]            # (8, 32) single tile
    rwb = misc[0:1, :]                              # (1, HD)  r_w_bias * SCALE
    rrb = misc[1:2, :]                              # (1, HD)  r_r_bias * SCALE
    gamma = misc[2:3, :]                            # (1, D)
    beta = misc[3:4, :]                             # (1, D)

    h = _layer_norm(x, gamma, beta) if PRE_LNORM else x            # (K, D)

    # Projections (SCALE already folded into Wq in the wrapper).
    q = _dot(h[TM:K_LEN, :], c32_ref[R_WQ:R_WQ + D_MODEL, :])      # (T, HD)
    k = _dot(h, c32_ref[R_WK:R_WK + D_MODEL, :])                   # (K, HD)
    v = _dot(h, c32_ref[R_WV:R_WV + D_MODEL, :])                   # (K, HD)
    rk = _dot(c32_ref[R_POS:R_POS + T * R_LEN, :],
              c32_ref[R_WR:R_WR + D_MODEL, :])                     # (T*R, HD) shift order

    qblk = c32_ref[R_QBLK:R_QBLK + 2 * T, :]                       # (2T, HD) 0/1
    kvblk = c32_ref[R_KVBLK:R_KVBLK + 2 * K_LEN, :]                # (2K, HD) 0/1
    maskb = c32_ref[R_MASK:R_MASK + 2 * T, :]                      # (2T, 32)
    maskb = maskb[:, :K_LEN]                                       # (2T, K) additive bias
    blk2 = c128_ref[R_BLK2:R_BLK2 + 2 * T, :]                      # (2T, T*R)
    gsum_t = c128_ref[R_GSUMT:R_GSUMT + R_LEN, :]                  # (R,  T*R)
    wout = c128_ref[R_WOUT:R_WOUT + HD, :]                         # (HD, 128)

    # Pack heads along sublanes: packed row r = h*T + i.  Block-diagonal masks
    # restrict each packed row to its own head's 16 feature columns, so head
    # separation never needs sub-128-lane slicing of activations.
    q2 = jnp.concatenate([q, q], axis=0)                           # (2T, HD)
    q_ac = (q2 + rwb) * qblk                                       # (2T, HD)
    q_bd = (q2 + rrb) * qblk                                       # (2T, HD)

    # AC: ac[h*T+i, j] = scale * (q_hi + rwb_h) . k_hj   ('ibnd,jbnd->ijbn')
    ac = _dot_nt(q_ac, k)                                          # (2T, K)

    # BD with relative shift expressed as selector matmuls on the MXU:
    #   big[h*T+i, i'*R+j] = scale * (q_hi + rrb_h) . r_h[(j + T-1-i') mod R]
    #   keep only the i'==i blocks (blk2) and collapse onto j (gsum^T).
    big = _dot_nt(q_bd, rk)                                        # (2T, T*R)
    bd = _dot_nt(big * blk2, gsum_t)                               # (2T, K)

    score = ac + bd + maskb                                        # (2T, K)
    m = jnp.max(score, axis=-1, keepdims=True)
    e = jnp.exp(score - m)
    prob2 = e * pl.reciprocal(jnp.sum(e, axis=-1, keepdims=True), approx=True)

    # (2T, K) -> (T, 2K): lanes [h*K:(h+1)*K] hold head h's probabilities.
    prob = jnp.concatenate([prob2[0:T, :], prob2[T:2 * T, :]], axis=1)   # (T, 2K)

    # Block-diagonal V so a single matmul yields av directly in (T, h*Dh + d) layout.
    v_bd = jnp.concatenate([v, v], axis=0) * kvblk                 # (2K, HD)
    av = _dot(prob, v_bd)                                          # (T, HD)

    out = _dot(av, wout)                                           # (T, 128) lane dense

    if not PRE_LNORM:   # dead branch for this config (PRE_LNORM=True)
        od = _layer_norm(out[:, :D_MODEL], gamma, beta)
        out = jnp.concatenate(
            [od, jnp.zeros((T, D_PAD - D_MODEL), od.dtype)], axis=1)

    o_ref[...] = out


# ------------------------------- wrapper (glue) --------------------------------
def mha_xl_forward(inpts, pos_emb, r_w_bias, r_r_bias, attn_mask, mems, params):
    f32 = jnp.float32
    cat = jnp.concatenate([mems, inpts], axis=0)                      # (K, B, D)
    x2d = jnp.transpose(cat, (1, 0, 2)).reshape(B * K_LEN, D_MODEL)   # batch-major rows
    pos2d = pos_emb.reshape(R_LEN, D_MODEL)

    # pos_emb rows pre-gathered in rel-shift order (layout plumbing only; the
    # r_net projection itself stays inside the kernel).
    i_idx = jnp.arange(T)[:, None]
    j_idx = jnp.arange(R_LEN)[None, :]
    gather_rows = (j_idx + (T - 1) - i_idx) % R_LEN                   # (T, R)
    pos_gath = pos2d[gather_rows.reshape(-1)].astype(f32)             # (T*R, D)

    # ------------------ width-32 slab (one DMA, resident) --------------------
    wqkv = params["Wqkv"].astype(f32)
    w_q = wqkv[:, 0:HD] * SCALE                                       # fold SCALE into Wq
    w_k = wqkv[:, HD:2 * HD]
    w_v = wqkv[:, 2 * HD:3 * HD]
    w_r = params["Wr"].astype(f32)

    misc = jnp.zeros((8, D_MODEL), f32)
    misc = misc.at[0].set(r_w_bias.reshape(HD).astype(f32) * SCALE)
    misc = misc.at[1].set(r_r_bias.reshape(HD).astype(f32) * SCALE)
    misc = misc.at[2].set(params["gamma"].astype(f32))
    misc = misc.at[3].set(params["beta"].astype(f32))

    maskb = jnp.where(attn_mask, f32(NEG_BIAS), f32(0.0))             # (T, K)
    mask2 = jnp.tile(maskb, (N_HEAD, 1))                              # (2T, K)
    mask_pad = jnp.zeros((2 * T, D_MODEL), f32).at[:, :K_LEN].set(mask2)

    qblk = np.zeros((N_HEAD * T, HD), np.float32)
    kvblk = np.zeros((N_HEAD * K_LEN, HD), np.float32)
    for hh in range(N_HEAD):
        qblk[hh * T:(hh + 1) * T, hh * D_HEAD:(hh + 1) * D_HEAD] = 1.0
        kvblk[hh * K_LEN:(hh + 1) * K_LEN, hh * D_HEAD:(hh + 1) * D_HEAD] = 1.0

    slab32 = jnp.concatenate(
        [pos_gath, w_q, w_k, w_v, w_r, misc, mask_pad,
         jnp.asarray(qblk), jnp.asarray(kvblk)], axis=0)              # (328, 32)

    # ------------------ width-128 slab (one DMA, resident) -------------------
    wout_pad = jnp.zeros((HD, D_PAD), f32).at[:, :D_MODEL].set(params["Wout"].astype(f32))
    mm = np.arange(T * R_LEN)
    blk2 = (mm[None, :] // R_LEN ==
            (np.arange(N_HEAD * T)[:, None] % T)).astype(np.float32)  # (2T, T*R)
    gsum_t = (mm[None, :] % R_LEN ==
              np.arange(R_LEN)[:, None]).astype(np.float32)           # (R, T*R)
    slab128 = jnp.concatenate(
        [wout_pad, jnp.asarray(blk2), jnp.asarray(gsum_t)], axis=0)   # (64, 128)

    out2d = pl.pallas_call(
        _mha_xl_kernel,
        out_shape=jax.ShapeDtypeStruct((B * T, D_PAD), jnp.float32),
        grid=(B,),
        in_specs=[
            pl.BlockSpec((K_LEN, D_MODEL), lambda b: (b, 0)),         # x rows of batch b
            pl.BlockSpec((SLAB32_ROWS, D_MODEL), lambda b: (0, 0)),   # resident constants
            pl.BlockSpec((SLAB128_ROWS, D_PAD), lambda b: (0, 0)),    # resident constants
        ],
        out_specs=pl.BlockSpec((T, D_PAD), lambda b: (b, 0)),
        compiler_params=pltpu.CompilerParams(
            dimension_semantics=("parallel",)),                       # v7x: one TC per batch
    )(x2d.astype(f32), slab32, slab128)

    out = out2d[:, :D_MODEL]                                          # drop lane padding
    return jnp.transpose(out.reshape(B, T, D_MODEL), (1, 0, 2))       # (T, B, D)


# --------------------------- pure-JAX reference --------------------------------
def _ref_layer_norm(x, gamma, beta):
    mu = jnp.mean(x, axis=-1, keepdims=True)
    var = jnp.mean((x - mu) ** 2, axis=-1, keepdims=True)
    return (x - mu) / jnp.sqrt(var + LN_EPS) * gamma + beta


def _ref_rel_shift(x):
    # x: (I, J, B, H), exact port of the torch view-based shift
    zp = jnp.zeros((x.shape[0], 1) + x.shape[2:], x.dtype)
    xp = jnp.concatenate([zp, x], axis=1)
    xp = xp.reshape((x.shape[1] + 1, x.shape[0]) + x.shape[2:])
    return xp[1:].reshape(x.shape)


def ref_forward(inpts, pos_emb, r_w_bias, r_r_bias, attn_mask, mems, params):
    cat = jnp.concatenate([mems, inpts], axis=0)                       # (K, B, D)
    h = _ref_layer_norm(cat, params["gamma"], params["beta"]) if PRE_LNORM else cat
    w_heads = h @ params["Wqkv"]                                       # (K, B, 3HD)
    r_head_k = pos_emb @ params["Wr"]                                  # (R, 1, HD)
    w_q, w_k, w_v = jnp.split(w_heads, 3, axis=-1)
    w_q = w_q[-T:].reshape(T, B, N_HEAD, D_HEAD)
    w_k = w_k.reshape(K_LEN, B, N_HEAD, D_HEAD)
    w_v = w_v.reshape(K_LEN, B, N_HEAD, D_HEAD)
    r_k = r_head_k.reshape(R_LEN, N_HEAD, D_HEAD)
    ac = jnp.einsum("ibnd,jbnd->ijbn", w_q + r_w_bias, w_k)
    bd = jnp.einsum("ibnd,jnd->ijbn", w_q + r_r_bias, r_k)
    bd = _ref_rel_shift(bd)
    score = (ac + bd) * SCALE                                          # (T, K, B, H)
    score = jnp.where(attn_mask[:, :, None, None], -jnp.inf, score)    # broadcast over B, H
    prob = jax.nn.softmax(score, axis=1)
    av = jnp.einsum("ijbn,jbnd->ibnd", prob, w_v).reshape(T, B, HD)
    out = av @ params["Wout"]
    if not PRE_LNORM:
        out = _ref_layer_norm(out, params["gamma"], params["beta"])
    return out


# ----------------------------------- main --------------------------------------
if __name__ == "__main__":
    key = jax.random.PRNGKey(0)
    ks = jax.random.split(key, 12)

    params = {
        # weights stored as (in, out) == torch_weight.T (Linear has bias=False)
        "Wqkv": jax.random.normal(ks[0], (D_MODEL, 3 * HD), jnp.float32) * 0.1,
        "Wr":   jax.random.normal(ks[1], (D_MODEL, HD), jnp.float32) * 0.1,
        "Wout": jax.random.normal(ks[2], (HD, D_MODEL), jnp.float32) * 0.1,
        "gamma": 1.0 + 0.1 * jax.random.normal(ks[3], (D_MODEL,), jnp.float32),
        "beta": 0.1 * jax.random.normal(ks[4], (D_MODEL,), jnp.float32),
    }

    inpts = jax.random.normal(ks[5], (T, B, D_MODEL), jnp.float32)
    mems = jax.random.normal(ks[6], (TM, B, D_MODEL), jnp.float32)
    pos_emb = jax.random.normal(ks[7], (R_LEN, 1, D_MODEL), jnp.float32)
    r_w_bias = jax.random.normal(ks[8], (N_HEAD, D_HEAD), jnp.float32) * 0.1
    r_r_bias = jax.random.normal(ks[9], (N_HEAD, D_HEAD), jnp.float32) * 0.1
    # causal mask with memory: query i may attend to keys j <= i + TM
    attn_mask = jnp.arange(K_LEN)[None, :] > (jnp.arange(T)[:, None] + TM)

    out = mha_xl_forward(inpts, pos_emb, r_w_bias, r_r_bias, attn_mask, mems, params)
    out = jax.block_until_ready(out)

    ref = ref_forward(inpts, pos_emb, r_w_bias, r_r_bias, attn_mask, mems, params)
    ref = jax.block_until_ready(ref)

    np.testing.assert_allclose(np.asarray(out), np.asarray(ref), rtol=2e-2, atol=2e-2)
    print("KERNEL_OK")
</pallas_src>

<mosaic_0001>
module attributes {stable_mosaic.version = 11 : i64} {
  func.func @_mha_xl_kernel(%arg0: i32, %arg1: memref<16x32xf32, #tpu.memory_space<vmem>>, %arg2: memref<328x32xf32, #tpu.memory_space<vmem>>, %arg3: memref<64x128xf32, #tpu.memory_space<vmem>>, %arg4: memref<8x128xf32, #tpu.memory_space<vmem>>) attributes {dimension_semantics = [#tpu.dimension_semantics<parallel>], iteration_bounds = array<i64: 2>, scalar_prefetch = 0 : i64, scratch_operands = 0 : i64, tpu.core_type = #tpu.core_type<tc>, window_params = [{transform_indices = @transform_0, window_bounds = array<i64: 16, 32>}, {pipeline_mode = #tpu.pipeline_mode<synchronous>, transform_indices = @transform_1, window_bounds = array<i64: 328, 32>}, {pipeline_mode = #tpu.pipeline_mode<synchronous>, transform_indices = @transform_2, window_bounds = array<i64: 64, 128>}, {transform_indices = @transform_3, window_bounds = array<i64: 8, 128>}]} {
    %c0 = arith.constant 0 : index
    %c0_0 = arith.constant 0 : index
    %0 = vector.load %arg1[%c0, %c0_0] : memref<16x32xf32, #tpu.memory_space<vmem>>, vector<16x32xf32>
    %c256 = arith.constant 256 : index
    %c0_1 = arith.constant 0 : index
    %1 = vector.load %arg2[%c256, %c0_1] : memref<328x32xf32, #tpu.memory_space<vmem>>, vector<8x32xf32>
    %2 = vector.extract_strided_slice %1 {offsets = [0, 0], sizes = [1, 32], strides = [1, 1]} : vector<8x32xf32> to vector<1x32xf32>
    %3 = vector.extract_strided_slice %1 {offsets = [1, 0], sizes = [1, 32], strides = [1, 1]} : vector<8x32xf32> to vector<1x32xf32>
    %4 = vector.extract_strided_slice %1 {offsets = [2, 0], sizes = [1, 32], strides = [1, 1]} : vector<8x32xf32> to vector<1x32xf32>
    %5 = vector.extract_strided_slice %1 {offsets = [3, 0], sizes = [1, 32], strides = [1, 1]} : vector<8x32xf32> to vector<1x32xf32>
    %cst = arith.constant dense<0.000000e+00> : vector<16xf32>
    %6 = vector.multi_reduction <add>, %0, %cst [1] : vector<16x32xf32> to vector<16xf32>
    %7 = vector.shape_cast %6 : vector<16xf32> to vector<16x1xf32>
    %cst_2 = arith.constant 3.200000e+01 : f32
    %8 = vector.broadcast %cst_2 : f32 to vector<16x1xf32>
    %9 = arith.divf %7, %8 : vector<16x1xf32>
    %10 = vector.broadcast %9 : vector<16x1xf32> to vector<16x32xf32>
    %11 = arith.subf %0, %10 : vector<16x32xf32>
    %12 = arith.mulf %11, %11 : vector<16x32xf32>
    %cst_3 = arith.constant dense<0.000000e+00> : vector<16xf32>
    %13 = vector.multi_reduction <add>, %12, %cst_3 [1] : vector<16x32xf32> to vector<16xf32>
    %14 = vector.shape_cast %13 : vector<16xf32> to vector<16x1xf32>
    %cst_4 = arith.constant 3.200000e+01 : f32
    %15 = vector.broadcast %cst_4 : f32 to vector<16x1xf32>
    %16 = arith.divf %14, %15 : vector<16x1xf32>
    %17 = vector.broadcast %9 : vector<16x1xf32> to vector<16x32xf32>
    %18 = arith.subf %0, %17 : vector<16x32xf32>
    %cst_5 = arith.constant 9.99999974E-6 : f32
    %19 = vector.broadcast %cst_5 : f32 to vector<16x1xf32>
    %20 = arith.addf %16, %19 : vector<16x1xf32>
    %21 = math.rsqrt %20 : vector<16x1xf32>
    %22 = vector.broadcast %21 : vector<16x1xf32> to vector<16x32xf32>
    %23 = arith.mulf %18, %22 : vector<16x32xf32>
    %24 = vector.broadcast %4 : vector<1x32xf32> to vector<16x32xf32>
    %25 = arith.mulf %23, %24 : vector<16x32xf32>
    %26 = vector.broadcast %5 : vector<1x32xf32> to vector<16x32xf32>
    %27 = arith.addf %25, %26 : vector<16x32xf32>
    %28 = vector.extract_strided_slice %27 {offsets = [8, 0], sizes = [8, 32], strides = [1, 1]} : vector<16x32xf32> to vector<8x32xf32>
    %c128 = arith.constant 128 : index
    %c0_6 = arith.constant 0 : index
    %29 = vector.load %arg2[%c128, %c0_6] : memref<328x32xf32, #tpu.memory_space<vmem>>, vector<32x32xf32>
    %cst_7 = arith.constant dense<0.000000e+00> : vector<8x32xf32>
    %30 = tpu.matmul %28, %29, %cst_7 {dimension_numbers = #tpu.dot_dimension_numbers<[1], [0], [0], [1], [0, 0, 1, 1], [], []>} : vector<8x32xf32>, vector<32x32xf32>, vector<8x32xf32> -> vector<8x32xf32>
    %c160 = arith.constant 160 : index
    %c0_8 = arith.constant 0 : index
    %31 = vector.load %arg2[%c160, %c0_8] : memref<328x32xf32, #tpu.memory_space<vmem>>, vector<32x32xf32>
    %cst_9 = arith.constant dense<0.000000e+00> : vector<16x32xf32>
    %32 = tpu.matmul %27, %31, %cst_9 {dimension_numbers = #tpu.dot_dimension_numbers<[1], [0], [0], [1], [0, 0, 1, 1], [], []>} : vector<16x32xf32>, vector<32x32xf32>, vector<16x32xf32> -> vector<16x32xf32>
    %c192 = arith.constant 192 : index
    %c0_10 = arith.constant 0 : index
    %33 = vector.load %arg2[%c192, %c0_10] : memref<328x32xf32, #tpu.memory_space<vmem>>, vector<32x32xf32>
    %cst_11 = arith.constant dense<0.000000e+00> : vector<16x32xf32>
    %34 = tpu.matmul %27, %33, %cst_11 {dimension_numbers = #tpu.dot_dimension_numbers<[1], [0], [0], [1], [0, 0, 1, 1], [], []>} : vector<16x32xf32>, vector<32x32xf32>, vector<16x32xf32> -> vector<16x32xf32>
    %c0_12 = arith.constant 0 : index
    %c0_13 = arith.constant 0 : index
    %35 = vector.load %arg2[%c0_12, %c0_13] : memref<328x32xf32, #tpu.memory_space<vmem>>, vector<128x32xf32>
    %c224 = arith.constant 224 : index
    %c0_14 = arith.constant 0 : index
    %36 = vector.load %arg2[%c224, %c0_14] : memref<328x32xf32, #tpu.memory_space<vmem>>, vector<32x32xf32>
    %cst_15 = arith.constant dense<0.000000e+00> : vector<128x32xf32>
    %37 = tpu.matmul %35, %36, %cst_15 {dimension_numbers = #tpu.dot_dimension_numbers<[1], [0], [0], [1], [0, 0, 1, 1], [], []>} : vector<128x32xf32>, vector<32x32xf32>, vector<128x32xf32> -> vector<128x32xf32>
    %c280 = arith.constant 280 : index
    %c0_16 = arith.constant 0 : index
    %38 = vector.load %arg2[%c280, %c0_16] : memref<328x32xf32, #tpu.memory_space<vmem>>, vector<16x32xf32>
    %c296 = arith.constant 296 : index
    %c0_17 = arith.constant 0 : index
    %39 = vector.load %arg2[%c296, %c0_17] : memref<328x32xf32, #tpu.memory_space<vmem>>, vector<32x32xf32>
    %c264 = arith.constant 264 : index
    %c0_18 = arith.constant 0 : index
    %40 = vector.load %arg2[%c264, %c0_18] : memref<328x32xf32, #tpu.memory_space<vmem>>, vector<16x32xf32>
    %41 = vector.extract_strided_slice %40 {offsets = [0, 0], sizes = [16, 16], strides = [1, 1]} : vector<16x32xf32> to vector<16x16xf32>
    %c32 = arith.constant 32 : index
    %c0_19 = arith.constant 0 : index
    %42 = vector.load %arg3[%c32, %c0_19] : memref<64x128xf32, #tpu.memory_space<vmem>>, vector<16x128xf32>
    %c48 = arith.constant 48 : index
    %c0_20 = arith.constant 0 : index
    %43 = vector.load %arg3[%c48, %c0_20] : memref<64x128xf32, #tpu.memory_space<vmem>>, vector<16x128xf32>
    %c0_21 = arith.constant 0 : index
    %c0_22 = arith.constant 0 : index
    %44 = vector.load %arg3[%c0_21, %c0_22] : memref<64x128xf32, #tpu.memory_space<vmem>>, vector<32x128xf32>
    %45 = tpu.concatenate %30, %30 in 0 : vector<8x32xf32>, vector<8x32xf32> -> vector<16x32xf32>
    %46 = vector.broadcast %2 : vector<1x32xf32> to vector<16x32xf32>
    %47 = arith.addf %45, %46 : vector<16x32xf32>
    %48 = arith.mulf %47, %38 : vector<16x32xf32>
    %49 = vector.broadcast %3 : vector<1x32xf32> to vector<16x32xf32>
    %50 = arith.addf %45, %49 : vector<16x32xf32>
    %51 = arith.mulf %50, %38 : vector<16x32xf32>
    %cst_23 = arith.constant dense<0.000000e+00> : vector<16x16xf32>
    %52 = tpu.matmul %48, %32, %cst_23 {dimension_numbers = #tpu.dot_dimension_numbers<[1], [1], [0], [0], [0, 0, 1, 0], [], []>} : vector<16x32xf32>, vector<16x32xf32>, vector<16x16xf32> -> vector<16x16xf32>
    %cst_24 = arith.constant dense<0.000000e+00> : vector<16x128xf32>
    %53 = tpu.matmul %51, %37, %cst_24 {dimension_numbers = #tpu.dot_dimension_numbers<[1], [1], [0], [0], [0, 0, 1, 0], [], []>} : vector<16x32xf32>, vector<128x32xf32>, vector<16x128xf32> -> vector<16x128xf32>
    %54 = arith.mulf %53, %42 : vector<16x128xf32>
    %cst_25 = arith.constant dense<0.000000e+00> : vector<16x16xf32>
    %55 = tpu.matmul %54, %43, %cst_25 {dimension_numbers = #tpu.dot_dimension_numbers<[1], [1], [0], [0], [0, 0, 1, 0], [], []>} : vector<16x128xf32>, vector<16x128xf32>, vector<16x16xf32> -> vector<16x16xf32>
    %56 = arith.addf %52, %55 : vector<16x16xf32>
    %57 = arith.addf %56, %41 : vector<16x16xf32>
    %cst_26 = arith.constant dense<0xFF800000> : vector<16xf32>
    %58 = vector.multi_reduction <maximumf>, %57, %cst_26 [1] : vector<16x16xf32> to vector<16xf32>
    %59 = vector.shape_cast %58 : vector<16xf32> to vector<16x1xf32>
    %60 = vector.broadcast %59 : vector<16x1xf32> to vector<16x16xf32>
    %61 = arith.subf %57, %60 : vector<16x16xf32>
    %62 = math.exp %61 : vector<16x16xf32>
    %cst_27 = arith.constant dense<0.000000e+00> : vector<16xf32>
    %63 = vector.multi_reduction <add>, %62, %cst_27 [1] : vector<16x16xf32> to vector<16xf32>
    %64 = vector.shape_cast %63 : vector<16xf32> to vector<16x1xf32>
    %65 = tpu.reciprocal %64 {approx = true} : vector<16x1xf32> -> vector<16x1xf32>
    %66 = vector.broadcast %65 : vector<16x1xf32> to vector<16x16xf32>
    %67 = arith.mulf %62, %66 : vector<16x16xf32>
    %68 = vector.extract_strided_slice %67 {offsets = [0, 0], sizes = [8, 16], strides = [1, 1]} : vector<16x16xf32> to vector<8x16xf32>
    %69 = vector.extract_strided_slice %67 {offsets = [8, 0], sizes = [8, 16], strides = [1, 1]} : vector<16x16xf32> to vector<8x16xf32>
    %70 = tpu.concatenate %68, %69 in 1 : vector<8x16xf32>, vector<8x16xf32> -> vector<8x32xf32>
    %71 = tpu.concatenate %34, %34 in 0 : vector<16x32xf32>, vector<16x32xf32> -> vector<32x32xf32>
    %72 = arith.mulf %71, %39 : vector<32x32xf32>
    %cst_28 = arith.constant dense<0.000000e+00> : vector<8x32xf32>
    %73 = tpu.matmul %70, %72, %cst_28 {dimension_numbers = #tpu.dot_dimension_numbers<[1], [0], [0], [1], [0, 0, 1, 1], [], []>} : vector<8x32xf32>, vector<32x32xf32>, vector<8x32xf32> -> vector<8x32xf32>
    %cst_29 = arith.constant dense<0.000000e+00> : vector<8x128xf32>
    %74 = tpu.matmul %73, %44, %cst_29 {dimension_numbers = #tpu.dot_dimension_numbers<[1], [0], [0], [1], [0, 0, 1, 1], [], []>} : vector<8x32xf32>, vector<32x128xf32>, vector<8x128xf32> -> vector<8x128xf32>
    %c0_30 = arith.constant 0 : index
    %c0_31 = arith.constant 0 : index
    %75 = vector.load %arg4[%c0_30, %c0_31] : memref<8x128xf32, #tpu.memory_space<vmem>>, vector<8x128xf32>
    tpu.vector_store %arg4[%c0_30, %c0_31], %74 {strides = array<i32>} : memref<8x128xf32, #tpu.memory_space<vmem>>, vector<8x128xf32>,
    return
  }
  func.func @transform_0(%arg0: i32) -> (i32, i32) {
    %c0_i32 = arith.constant 0 : i32
    %c0_i32_0 = arith.constant 0 : i32
    return %arg0, %c0_i32 : i32, i32
  }
  func.func @transform_1(%arg0: i32) -> (i32, i32) {
    %c0_i32 = arith.constant 0 : i32
    %c0_i32_0 = arith.constant 0 : i32
    %c0_i32_1 = arith.constant 0 : i32
    return %c0_i32, %c0_i32_0 : i32, i32
  }
  func.func @transform_2(%arg0: i32) -> (i32, i32) {
    %c0_i32 = arith.constant 0 : i32
    %c0_i32_0 = arith.constant 0 : i32
    %c0_i32_1 = arith.constant 0 : i32
    return %c0_i32, %c0_i32_0 : i32, i32
  }
  func.func @transform_3(%arg0: i32) -> (i32, i32) {
    %c0_i32 = arith.constant 0 : i32
    %c0_i32_0 = arith.constant 0 : i32
    return %arg0, %c0_i32 : i32, i32
  }
}

</mosaic_0001>

<bundles_post_ra>
// kernel: tpu_custom_call.1
= control target key start
LH: loop header
LB: loop body
LE: loop exit
PB: predicated region body
PF: predicated region fallthrough
CT: control target
= control target key end

     0   :  { %8 = vsyncpa [#allocation3], 0  ;;  %s1304_s0 = inlined_call_operand.vmem [shape: f32[32,32], index: 0, kind: input, shape index: {}]   ;;  %s1305_s1 = inlined_call_operand.vmem [shape: f32[328,32], index: 1, kind: input, shape index: {}]   ;;  %s1306_s2 = inlined_call_operand.vmem [shape: f32[64,128], index: 2, kind: input, shape index: {}]   ;;  %s1307_s3 = inlined_call_operand.hbm [shape: f32[16,128], index: 3, kind: output, shape index: {}]  }
   0x1   :  { %10 = vsyncpa [#allocation3 + $0x1], 0  ;;  %s971_s12 = smov 0   ;;  %s973_s13 = smov 0  }
   0x2   :  { %s975_s14 = smov 0   ;;  %s977_s15 = smov 0  }
   0x3 LB: > { %s992_s16 = sadd.s32 4294967295, %s947_s15   ;;  %s766_s17 = sadd.s32 4294967294, %s947_s15   ;;  %s947_s15 = sphi %s977_s15, %s1313_s15   ;;  %s943_s14 = sphi %s975_s14, %s1312_s14   ;;  %s939_s13 = sphi %s973_s13, %s1311_s13   ;;  %s935_s12 = sphi %s971_s12, %s1310_s12  }
   0x4   : > { %s996_s18 = sadd.s32 1, %s947_s15   ;;  %s91_s19 = sadd.s32 1, %s943_s14 }
   0x5   : > { %s88_s20 = ssub.s32 %s947_s15, %s996_s18  ;;  %p101_p0 = scmp.ne.s32.totalorder %s943_s14, %s939_s13 }
   0x6   : > { %p89_p1 = scmp.eq.s32.totalorder %s88_s20, 0  ;;  %p102_p2 = scmp.eq.s32.totalorder %s992_s16, 1 }
   0x7   : > { %p107_p3 = scmp.ne.s32.totalorder %s939_s13, %s935_s12  ;;  %p108_p4 = scmp.eq.s32.totalorder %s766_s17, 1 }
   0x8   : > { %s1007_s21 = scalar_select %p89_p1, %s943_s14, %s91_s19  }
   0x9   : > { %p1009_p5 = por %p102_p2, %p101_p0  ;;  %p1013_p6 = por %p108_p4, %p107_p3 }
   0xa   : > { %p769_p7 = scmp.ge.s32.totalorder %s947_s15, 1  ;;  %p141_p8 = scmp.lt.s32.totalorder %s947_s15, 3 }
   0xc   : > { %p142_p9 = pnand %p769_p7, %p141_p8 }
   0xd   : > { %s771_s24 = sshll.u32 (!%p142_p9), %s992_s16, 1  ;;  %s950_s29 = smov (!%p142_p9), 16  }
   0xe   : > { %145 = sbr.rel (%p142_p9) target bundleno = 1363 (0x553), region = 32  ;;  %p166_p10 = scmp.lt.s32.totalorder (!%p142_p9), %s771_s24, 3 }
   0xf   : > { %s819_s19 = sshll.u32 (!%p142_p9), %s992_s16, 3 }
  0x10   : > { %s702_s25 = scalar_lea.hbm (!%p142_p9), %s1307_s3, %s819_s19 }
  0x11   : > { %s706_s28 = sshll.u32 (!%p142_p9), %s702_s25, 4  ;;  %s707_s28 = int_to_ptr.hbm [resolvable:$true] %s706_s28 }
  0x12   : > { %s899_s30 = sshra.s32 (!%p142_p9), %s707_s28, 4  ;;  %s900_s30 = int_to_ptr.hbm [resolvable:$true] %s899_s30 }
  0x13   : > { %v1023_v0 = vld [vmem:[%s1305_s1 + $0xf8] sm:$0xff]  ;;  %v1028_v1 = vld [vmem:[%s1305_s1 + $0xf0] sm:$0xff]  ;;  %v1034_v2 = vld [vmem:[%s1305_s1 + $0xe8] sm:$0xff]  ;;  %s1315_s24 = smov (!%p166_p10, %s771_s24), 3  ;;  %vm174_vm0 = vcmask 261120   ;;  %v949_v10 = vmov 32.0   ;;  %p906_p0 = scmp.lt.s32.totalorder %s900_s30, %s1307_s3 }
  0x14   : > { %823 = vmatpush.msra.mxu3 %v1023_v0  ;;  %v1040_v3 = vld [vmem:[%s1305_s1 + $0xe0] sm:$0xff]  ;;  %s772_s6 = sshll.u32 %s1315_s24, 3  ;;  %v323_v4 = vld [vmem:[%s1305_s1 + $0x38] sm:$0xff]  ;;  %871 = vrcp.f32 %v949_v10  ;;  %v325_v12 = vld [vmem:[%s1305_s1 + $0x48] sm:$0xff]  ;;  %vm612_vm8 = vcmask 130048   ;;  %s901_s4 = scalar_lea.hbm %s900_s30, 8 }
  0x15   : > { %s169_s11 = scalar_lea.vmem %s1304_s0, %s772_s6  ;;  %v324_v9 = vld [vmem:[%s1305_s1 + $0x40] sm:$0xff]  ;;  %v326_v14 = vld [vmem:[%s1305_s1 + $0x50] sm:$0xff]  ;;  %v327_v17 = vld [vmem:[%s1305_s1 + $0x58] sm:$0xff]  ;;  %p902_p11 = scmp.ne.s32.totalorder %s900_s30, %s901_s4 }
  0x16   : > { %825 = vmatpush.msra.mxu3 %v1028_v1  ;;  %v172_v5 = vld [vmem:[%s169_s11 + $0x8] sm:$0xff]  ;;  %v171_v7 = vld [vmem:[%s169_s11] sm:$0xff]  ;;  %v330_v32 = vld [vmem:[%s1305_s1 + $0x70] sm:$0xff]  ;;  %s162_s11 = sand.u32 1, %s939_s13   ;;  %s905_s6 = scalar_lea.hbm %s1307_s3, 16 }
  0x17   : > { %v178_v6 = vsel %vm174_vm0, %v172_v5, 0.0  ;;  %v175_v8 = vsel %vm174_vm0, %v171_v7, 0.0  ;;  %v328_v22 = vld [vmem:[%s1305_s1 + $0x60] sm:$0xff]  ;;  %v329_v28 = vld [vmem:[%s1305_s1 + $0x68] sm:$0xff]  ;;  %v331_v33 = vld [vmem:[%s1305_s1 + $0x78] sm:$0xff]  ;;  %s770_s17 = sshll.u32 %s162_s11, 3  ;;  %p903_p12 = pnand %p902_p11, %p1009_p5 }
  0x18   : > { %827 = vmatpush.msra.mxu3 %v1034_v2  ;;  %179 = vadd.xlane.f32.xlu0 %v178_v6  ;;  %v235_v37 = vld [vmem:[%s1305_s1 + $0x98] sm:$0xff]  ;;  %v234_v38 = vld [vmem:[%s1305_s1 + $0x90] sm:$0xff]  ;;  %v233_v39 = vld [vmem:[%s1305_s1 + $0x88] sm:$0xff]  ;;  %s164_s26 = scalar_lea.vmem [#allocation2], %s770_s17  ;;  %p907_p1 = scmp.lt.s32.totalorder %s905_s6, %s901_s4 }
  0x19   : > { %251 = vmatpush.msra.mxu2 %v235_v37  ;;  %v232_v40 = vld [vmem:[%s1305_s1 + $0x80] sm:$0xff]  ;;  %v292_v42 = vld [vmem:[%s1305_s1 + $0xd8] sm:$0xff]  ;;  %v291_v44 = vld [vmem:[%s1305_s1 + $0xd0] sm:$0xff]  ;;  %s704_s27 = sshll.u32 %s164_s26, 4  ;;  %p904_p13 = pneg %p903_p12  ;;  %s705_s27 = int_to_ptr.vmem [resolvable:$true] %s704_s27 }
  0x1a   : > { %829 = vmatpush.msra.mxu3 %v1040_v3  ;;  %v872_v11 = vpop.eup %871  ;;  %v262_v43 = vld [vmem:[%s1305_s1 + $0xb8] sm:$0xff]  ;;  %v261_v45 = vld [vmem:[%s1305_s1 + $0xb0] sm:$0xff]  ;;  %v290_v46 = vld [vmem:[%s1305_s1 + $0xc8] sm:$0xff]  ;;  %p908_p2 = por %p907_p1, %p906_p0 }
  0x1b   : > { %785 = vmatmul.msk.f32.vlgmr.msra.gmra.mxu3 %vm174_vm0, %v323_v4  ;;  %v182_v13 = vmul.f32 32.0, %v872_v11  ;;  %vm186_vm1 = vweird.f32 %v872_v11  ;;  %252 = vmatpush.msra.mxu2 %v234_v38  ;;  %v260_v47 = vld [vmem:[%s1305_s1 + $0xa8] sm:$0xff]  ;;  %v289_v50 = vld [vmem:[%s1305_s1 + $0xc0] sm:$0xff]  ;;  %v453_v38 = vld [vmem:[%s1305_s1 + $0x138] sm:$0xff] }
  0x1c   : > { %278 = vmatpush.msra.mxu1 %v262_v43  ;;  %v259_v51 = vld [vmem:[%s1305_s1 + $0xa0] sm:$0xff]  ;;  %v451_v43 = vld [vmem:[%s1305_s1 + $0x128] sm:$0xff]  ;;  %p909_p3 = pnand %p908_p2, %p904_p13 }
  0x1d   : > { %v183_v15 = vsub.f32 1.0, %v182_v13  ;;  %253 = vmatpush.msra.mxu2 %v233_v39  ;;  %v1146_v63 = vld [vmem:[%s1305_s1 + $0x100] sm:$0xff] }
  0x1e   : > { %279 = vmatpush.msra.mxu1 %v261_v45  ;;  %v450_v45 = vld [vmem:[%s1305_s1 + $0x120] sm:$0xff] }
  0x1f   : > { %v184_v16 = vmul.f32 %v872_v11, %v183_v15  ;;  %254 = vmatpush.msra.mxu2 %v232_v40 }
  0x20   : > { %176 = vadd.xlane.f32.xlu0 %v175_v8  ;;  %280 = vmatpush.msra.mxu1 %v260_v47  ;;  %v226_v8 = vperm.slane %v1146_v63, 2 }
  0x21   : > { %v185_v18 = vadd.f32 %v872_v11, %v184_v16  ;;  %305 = vmatpush.msrb.mxu2 %v292_v42 }
  0x22   : > { %281 = vmatpush.msra.mxu1 %v259_v51 }
  0x23   : > { %786 = vmatmul.msk.f32.gmra.mxu3 %vm174_vm0, %v324_v9  ;;  %v187_v19 = vsel %vm186_vm1, %v872_v11, %v185_v18  ;;  %306 = vmatpush.msrb.mxu2 %v291_v44 }
  0x24   : > { %396 = vmatpush.msrb.mxu1 %v1023_v0 }
  0x25   : > { %307 = vmatpush.msrb.mxu2 %v290_v46 }
  0x26   : > { %397 = vmatpush.msrb.mxu1 %v1028_v1 }
  0x27   : > { %308 = vmatpush.msrb.mxu2 %v289_v50 }
  0x28   : > { %398 = vmatpush.msrb.mxu1 %v1034_v2 }
  0x2a   : > { %399 = vmatpush.msrb.mxu1 %v1040_v3 }
  0x2b   : > { %787 = vmatmul.msk.f32.gmra.mxu3 %vm174_vm0, %v325_v12  ;;  %v229_v12 = vperm.slane %v1146_v63, 3 }
  0x33   : > { %788 = vmatmul.msk.f32.gmra.mxu3 %vm174_vm0, %v326_v14 }
  0x3b   : > { %789 = vmatmul.msk.f32.gmra.mxu3 %vm174_vm0, %v327_v17 }
  0x43   : > { %790 = vmatmul.msk.f32.gmra.mxu3 %vm174_vm0, %v328_v22 }
  0x4b   : > { %791 = vmatmul.msk.f32.gmra.mxu3 %vm174_vm0, %v329_v28  ;;  %v459_v28 = vld [vmem:[%s1306_s2 + $0x30] sm:$0xff] }
  0x53   : > { %792 = vmatmul.msk.f32.gmra.mxu3 %vm174_vm0, %v330_v32 }
  0x5b   : > { %793 = vmatmul.msk.f32.gmra.mxu3 %vm174_vm0, %v331_v33 }
  0x8b   : > { %v180_v20 = vpop.xlane.xlu0 %179 }
  0x8c   : > { %v189_v21 = vmul.f32 %v187_v19, %v180_v20 }
  0x8e   : > { %v1072_v23 = vsub.f32 %v172_v5, %v189_v21 }
  0x90   : > { %v193_v24 = vmul.f32 %v1072_v23, %v1072_v23 }
  0x92   : > { %v197_v25 = vsel %vm174_vm0, %v193_v24, 0.0  ;;  %v322_v24 = vld [vmem:[%s1305_s1 + $0x30] sm:$0xff] }
  0x93   : > { %198 = vadd.xlane.f32.xlu1 %v197_v25  ;;  %v177_v26 = vpop.xlane.xlu0 %176  ;;  %v318_v25 = vld [vmem:[%s1305_s1 + $0x10] sm:$0xff] }
  0x94   : > { %v188_v27 = vmul.f32 %v187_v19, %v177_v26  ;;  %v319_v26 = vld [vmem:[%s1305_s1 + $0x18] sm:$0xff] }
  0x96   : > { %v1081_v29 = vsub.f32 %v171_v7, %v188_v27  ;;  %v460_v27 = vld [vmem:[%s1306_s2 + $0x38] sm:$0xff] }
  0x98   : > { %v192_v30 = vmul.f32 %v1081_v29, %v1081_v29 }
  0x9a   : > { %v194_v31 = vsel %vm174_vm0, %v192_v30, 0.0 }
  0x9b   : > { %195 = vadd.xlane.f32.xlu1 %v194_v31  ;;  %v465_v31 = vperm.slane %v1146_v63, 0 }
  0x9e   : > { %v1095_v34 = vpop.f32.mrf.mxu3 }
  0xa6   : > { %v1097_v35 = vpop.f32.mrf.mxu3 }
  0xae   : > { %v1099_v36 = vpop.f32.mrf.mxu3 }
  0xb6   : > { %v1113_v41 = vpop.f32.mrf.mxu3 }
  0xbe   : > { %v434_v53 = vpop.f32.mrf.mxu3 }
  0xc6   : > { %v437_v59 = vpop.f32.mrf.mxu3 }
  0xce   : > { %v440_v7 = vpop.f32.mrf.mxu3 }
  0xd6   : > { %v443_v18 = vpop.f32.mrf.mxu3 }
 0x106   : > { %v199_v48 = vpop.xlane.xlu1 %198 }
 0x107   : > { %v201_v49 = vmul.f32 %v199_v48, %v187_v19 }
 0x109   : > { %v203_v52 = vadd.f32 1e-05, %v201_v49 }
 0x10b   : > { %873 = vrsqrt.f32 %v203_v52  ;;  %vm220_vm3 = vweird.f32 %v203_v52 }
 0x10e   : > { %v196_v54 = vpop.xlane.xlu1 %195 }
 0x10f   : > { %v200_v55 = vmul.f32 %v196_v54, %v187_v19 }
 0x111   : > { %v874_v56 = vpop.eup %873  ;;  %v202_v57 = vadd.f32 1e-05, %v200_v55  ;;  %v469_v55 = vperm.slane %v1146_v63, 1 }
 0x112   : > { %v215_v58 = vmul.f32 %v874_v56, %v203_v52  ;;  %vm221_vm2 = vweird.f32 %v874_v56 }
 0x113   : > { %875 = vrsqrt.f32 %v202_v57  ;;  %vm222_vm4 = vmor %vm220_vm3, %vm221_vm2  ;;  %vm210_vm6 = vweird.f32 %v202_v57 }
 0x114   : > { %v216_v60 = vmul.f32 %v874_v56, %v215_v58 }
 0x116   : > { %v217_v61 = vmul.f32 0.5, %v216_v60 }
 0x118   : > { %v218_v62 = vsub.f32 1.5, %v217_v61 }
 0x119   : > { %v876_v4 = vpop.eup %875 }
 0x11a   : > { %v219_v5 = vmul.f32 %v874_v56, %v218_v62  ;;  %v205_v6 = vmul.f32 %v876_v4, %v202_v57  ;;  %vm211_vm5 = vweird.f32 %v876_v4  ;;  %v458_v62 = vld [vmem:[%s1306_s2 + $0x28] sm:$0xff] }
 0x11b   : > { %vm212_vm7 = vmor %vm210_vm6, %vm211_vm5 }
 0x11c   : > { %v223_v9 = vsel %vm222_vm4, %v874_v56, %v219_v5  ;;  %v206_v10 = vmul.f32 %v876_v4, %v205_v6 }
 0x11d   : > { %v225_v11 = vmul.f32 %v223_v9, %v1072_v23  ;;  %v446_v23 = vpop.f32.mrf.mxu3  ;;  %v456_v9 = vld [vmem:[%s1305_s1 + $0x110] sm:$0xff] }
 0x11e   : > { %v207_v13 = vmul.f32 0.5, %v206_v10  ;;  %794 = vmatpush.xpose.msk.msra.mxu0 %vm174_vm0, %v446_v23 }
 0x11f   : > { %v228_v14 = vmul.f32 %v226_v8, %v225_v11 }
 0x120   : > { %v208_v15 = vsub.f32 1.5, %v207_v13 }
 0x121   : > { %v231_v16 = vadd.f32 %v229_v12, %v228_v14  ;;  %v455_v14 = vld [vmem:[%s1305_s1 + $0x108] sm:$0xff] }
 0x122   : > { %v209_v17 = vmul.f32 %v876_v4, %v208_v15  ;;  %795 = vmatpush.xpose.msk.msra.mxu0 %vm174_vm0, %v443_v18 }
 0x123   : > { %773 = vmatmul.msk.f32.vlgmr.msra.gmra.mxu2 %vm174_vm0, %v231_v16 }
 0x124   : > { %v213_v19 = vsel %vm212_vm7, %v876_v4, %v209_v17  ;;  %822 = vmatpush.msra.mxu2 %v1023_v0  ;;  %v320_v0 = vld [vmem:[%s1305_s1 + $0x20] sm:$0xff] }
 0x125   : > { %v224_v20 = vmul.f32 %v213_v19, %v1081_v29 }
 0x126   : > { %824 = vmatpush.msra.mxu2 %v1028_v1  ;;  %796 = vmatpush.xpose.msk.msra.mxu0 %vm174_vm0, %v440_v7  ;;  %v316_v1 = vld [vmem:[%s1305_s1] sm:$0xff] }
 0x127   : > { %v227_v21 = vmul.f32 %v226_v8, %v224_v20 }
 0x128   : > { %826 = vmatpush.msra.mxu2 %v1034_v2  ;;  %v321_v2 = vld [vmem:[%s1305_s1 + $0x28] sm:$0xff] }
 0x129   : > { %v230_v22 = vadd.f32 %v229_v12, %v227_v21 }
 0x12a   : > { %828 = vmatpush.msra.mxu2 %v1040_v3  ;;  %797 = vmatpush.xpose.msk.msra.mxu0 %vm174_vm0, %v437_v59  ;;  %v317_v3 = vld [vmem:[%s1305_s1 + $0x8] sm:$0xff]  ;;  %v457_v59 = vld [vmem:[%s1306_s2 + $0x20] sm:$0xff] }
 0x12b   : > { %774 = vmatmul.msk.f32.vlgmr.msra.gmra.mxu1 %vm174_vm0, %v230_v22  ;;  %776 = vmatmul.msk.f32.vlgmr.msrb.gmra.mxu2 %vm174_vm0, %v230_v22 }
 0x12c   : > { %566 = vmatpush.xpose.msra.mxu1 %v460_v27  ;;  %v463_v27 = vld [vmem:[%s1306_s2 + $0x10] sm:$0xff] }
 0x12e   : > { %798 = vmatpush.xpose.msk.msra.mxu0 %vm174_vm0, %v434_v53 }
 0x130   : > { %567 = vmatpush.xpose.msra.mxu1 %v459_v28  ;;  %v462_v28 = vld [vmem:[%s1306_s2 + $0x8] sm:$0xff] }
 0x132   : > { %799 = vmatpush.xpose.msk.msra.mxu0 %vm174_vm0, %v1113_v41  ;;  %v452_v41 = vld [vmem:[%s1305_s1 + $0x130] sm:$0xff] }
 0x133   : > { %775 = vmatmul.msk.f32.gmra.mxu1 %vm174_vm0, %v231_v16  ;;  %777 = vmatmul.msk.f32.gmra.mxu2 %vm174_vm0, %v231_v16 }
 0x136   : > { %800 = vmatpush.xpose.msk.msra.mxu0 %vm174_vm0, %v1099_v36  ;;  %v454_v36 = vld [vmem:[%s1305_s1 + $0x140] sm:$0xff] }
 0x13a   : > { %801 = vmatpush.xpose.msk.msra.mxu0 %vm174_vm0, %v1097_v35  ;;  %v449_v35 = vld [vmem:[%s1305_s1 + $0x118] sm:$0xff] }
 0x13b   : > { %782 = vmatmul.msk.f32.vlgmr.msra.gmra.mxu2 %vm174_vm0, %v320_v0  ;;  %778 = vmatmul.msk.f32.vlgmr.msrb.gmra.mxu1 %vm174_vm0, %v316_v1 }
 0x13e   : > { %802 = vmatpush.xpose.msk.msra.mxu0 %vm174_vm0, %v1095_v34 }
 0x143   : > { %783 = vmatmul.msk.f32.gmra.mxu2 %vm174_vm0, %v321_v2  ;;  %779 = vmatmul.msk.f32.gmra.mxu1 %vm174_vm0, %v317_v3 }
 0x14b   : > { %784 = vmatmul.msk.f32.gmra.mxu2 %vm174_vm0, %v322_v24  ;;  %780 = vmatmul.msk.f32.gmra.mxu1 %vm174_vm0, %v318_v25 }
 0x153   : > { %781 = vmatmul.msk.f32.gmra.mxu1 %vm174_vm0, %v319_v26  ;;  %v464_v26 = vld [vmem:[%s1306_s2 + $0x18] sm:$0xff] }
 0x1a6   : > { %v256_v29 = vpop.f32.mrf.mxu2 }
 0x1a7   : > { %v466_v34 = vadd.f32 %v465_v31, %v256_v29  ;;  %v470_v56 = vadd.f32 %v469_v55, %v256_v29  ;;  %v461_v29 = vld [vmem:[%s1306_s2] sm:$0xff] }
 0x1a8   : > { %v283_v30 = vpop.f32.mrf.mxu1 }
 0x1a9   : > { %v467_v37 = vmul.f32 %v466_v34, %v449_v35  ;;  %v468_v48 = vmul.f32 %v466_v34, %v450_v45  ;;  %v471_v57 = vmul.f32 %v470_v56, %v449_v35  ;;  %v472_v58 = vmul.f32 %v470_v56, %v450_v45 }
 0x1ae   : > { %v310_v32 = vpop.f32.mrf.mxu2 }
 0x1af   : > { %v642_v42 = vmul.f32 %v453_v38, %v310_v32  ;;  %v640_v47 = vmul.f32 %v451_v43, %v310_v32 }
 0x1b0   : > { %v286_v33 = vpop.f32.mrf.mxu1 }
 0x1b1   : > { %812 = vmatpush.xpose.msk.msrb.mxu2 %vm174_vm0, %v286_v33 }
 0x1b5   : > { %813 = vmatpush.xpose.msk.msrb.mxu2 %vm174_vm0, %v283_v30 }
 0x1b6   : > { %v313_v39 = vpop.f32.mrf.mxu2 }
 0x1b7   : > { %v643_v40 = vmul.f32 %v454_v36, %v313_v39  ;;  %v641_v46 = vmul.f32 %v452_v41, %v313_v39 }
 0x1b8   : > { %814 = vmatmul.msk.f32.vlgmr.msrb.gmra.mxu2 %vm174_vm0, %v467_v37  ;;  %v401_v44 = vpop.f32.mrf.mxu1 }
 0x1b9   : > { %659 = vmatpush.msrb.mxu1 %v643_v40  ;;  %682 = vmatpush.msra.mxu2 %v464_v26 }
 0x1bb   : > { %660 = vmatpush.msrb.mxu1 %v642_v42  ;;  %683 = vmatpush.msra.mxu2 %v463_v27 }
 0x1bd   : > { %661 = vmatpush.msrb.mxu1 %v641_v46  ;;  %684 = vmatpush.msra.mxu2 %v462_v28 }
 0x1be   : > { %v413_v49 = vpop.f32.mrf.mxu2 }
 0x1bf   : > { %662 = vmatpush.msrb.mxu1 %v640_v47  ;;  %685 = vmatpush.msra.mxu2 %v461_v29 }
 0x1c0   : > { %815 = vmatmul.msk.f32.gmra.mxu2 %vm174_vm0, %v468_v48  ;;  %v404_v50 = vpop.f32.mrf.mxu1 }
 0x1c6   : > { %v416_v51 = vpop.f32.mrf.mxu2 }
 0x1c8   : > { %v407_v53 = vpop.f32.mrf.mxu1 }
 0x1ce   : > { %v419_v52 = vpop.f32.mrf.mxu2 }
 0x1cf   : > { %803 = vmatpush.xpose.msk.msra.mxu0 %vm174_vm0, %v419_v52 }
 0x1d0   : > { %v410_v54 = vpop.f32.mrf.mxu1 }
 0x1d3   : > { %804 = vmatpush.xpose.msk.msra.mxu0 %vm174_vm0, %v416_v51 }
 0x1d7   : > { %805 = vmatpush.xpose.msk.msra.mxu0 %vm174_vm0, %v413_v49 }
 0x1db   : > { %806 = vmatpush.xpose.msk.msra.mxu0 %vm174_vm0, %v410_v54 }
 0x1df   : > { %807 = vmatpush.xpose.msk.msra.mxu0 %vm174_vm0, %v407_v53 }
 0x1e3   : > { %808 = vmatpush.xpose.msk.msra.mxu0 %vm174_vm0, %v404_v50 }
 0x1e7   : > { %809 = vmatpush.xpose.msk.msra.mxu0 %vm174_vm0, %v401_v44 }
 0x1ea   : > { %810 = vmatmul.msk.f32.vlgmr.msra.gmra.mxu0 %vm174_vm0, %v471_v57 }
 0x1f2   : > { %811 = vmatmul.msk.f32.gmra.mxu0 %vm174_vm0, %v472_v58 }
 0x23b   : > { %v604_v5 = vpop.f32.mrf.mxu2 }
 0x243   : > { %v607_v7 = vpop.f32.mrf.mxu2 }
 0x267   : > { %v544_v60 = vpop.f32.mrf.mxu0 }
 0x268   : > { %v550_v61 = vmul.f32 %v544_v60, %v457_v59 }
 0x26a   : > { %568 = vmatmul.f32.vlgmr.msra.gmra.mxu1 %v550_v61 }
 0x26f   : > { %v547_v63 = vpop.f32.mrf.mxu0 }
 0x270   : > { %v551_v4 = vmul.f32 %v547_v63, %v458_v62 }
 0x272   : > { %571 = vmatmul.f32.gmra.mxu1 %v551_v4 }
 0x2e7   : > { %v569_v6 = vpop.f32.mrf.mxu1 }
 0x2e8   : > { %v605_v12 = vadd.f32 %v604_v5, %v569_v6 }
 0x2ea   : > { %v610_v15 = vadd.f32 %v605_v12, %v455_v14 }
 0x2ec   : > { %v613_v16 = vsel %vm612_vm8, %v610_v15, -inf }
 0x2ef   : > { %v572_v8 = vpop.f32.mrf.mxu1 }
 0x2f0   : > { %v608_v10 = vadd.f32 %v607_v7, %v572_v8 }
 0x2f2   : > { %v611_v11 = vadd.f32 %v608_v10, %v456_v9 }
 0x2f4   : > { %v616_v13 = vsel %vm612_vm8, %v611_v11, -inf }
 0x2f5   : > { %617 = vmax.xlane.f32.xlu2 %v616_v13 }
 0x2fd   : > { %614 = vmax.xlane.f32.xlu2 %v613_v16 }
 0x368   : > { %v618_v17 = vpop.xlane.xlu2 %617 }
 0x369   : > { %v620_v18 = vsub.f32 %v611_v11, %v618_v17 }
 0x36b   : > { %v623_v19 = vmul.f32 1.442695, %v620_v18 }
 0x36d   : > { %877 = vpow2.f32 %v623_v19 }
 0x370   : > { %v615_v20 = vpop.xlane.xlu2 %614 }
 0x371   : > { %v619_v21 = vsub.f32 %v610_v15, %v615_v20 }
 0x373   : > { %v878_v22 = vpop.eup %877  ;;  %v621_v23 = vmul.f32 1.442695, %v619_v21 }
 0x374   : > { %v628_v0 = vsel %vm612_vm8, %v878_v22, 0.0 }
 0x375   : > { %879 = vpow2.f32 %v621_v23  ;;  %629 = vadd.xlane.f32.xlu0 %v628_v0 }
 0x37b   : > { %v880_v1 = vpop.eup %879 }
 0x37c   : > { %v625_v2 = vsel %vm612_vm8, %v880_v1, 0.0 }
 0x37d   : > { %626 = vadd.xlane.f32.xlu1 %v625_v2 }
 0x3e8   : > { %v630_v3 = vpop.xlane.xlu0 %629 }
 0x3e9   : > { %881 = vrcp.f32 %v630_v3 }
 0x3ef   : > { %v882_v24 = vpop.eup %881 }
 0x3f0   : > { %v634_v25 = vmul.f32 %v882_v24, %v878_v22  ;;  %v627_v30 = vpop.xlane.xlu1 %626 }
 0x3f1   : > { %883 = vrcp.f32 %v627_v30 }
 0x3f2   : > { %636 = vrot.lane.b32.xlu2 %v634_v25, %s950_s29  ;;  %s692_s29 = scalar_lea.sflag [#allocation3], %s162_s11 }
 0x3f7   : > { %v884_v31 = vpop.eup %883 }
 0x3f8   : > { %v633_v32 = vmul.f32 %v884_v31, %v880_v1 }
 0x44c   : > { %v637_v33 = vpop.permute.xlu2 %636 }
 0x44d   : > { %v639_v34 = vsel %vm612_vm8, %v633_v32, %v637_v33 }
 0x44e   : > { %816 = vmatmul.msk.f32.vlgmr.msrb.gmra.mxu1 %vm174_vm0, %v639_v34 }
 0x4cb   : > { %v664_v35 = vpop.f32.mrf.mxu1 }
 0x4cc   : > { %817 = vmatmul.msk.f32.vlgmr.msra.gmra.mxu2 %vm174_vm0, %v664_v35 }
 0x54f   : > { %v687_v36 = vpop.f32.mrf.mxu2 }
 0x550   : > { %690 = vst [vmem:[%s164_s26] sm:$0xff] %v687_v36 }
 0x551   : > { %912 = shalt.err (!%p909_p3)
}
 0x552   : > { %830 = dma.vmem_to_hbm [thread:$0]  (%p1009_p5), %s705_s27, 128, %s707_s28, %s692_s29  }
 0x553 PF: > { %p836_p4 = scmp.ge.s32.totalorder %s947_s15, 2  ;;  %s718_s9 = sand.u32 1, %s935_s12  }
 0x554   : > { %s719_s10 = scalar_lea.sflag [#allocation3], %s718_s9 }
 0x555   : > { %p833_p7 = pnand %p836_p4, %p1013_p6 }
 0x557   : > { %p834_p8 = pneg %p833_p7 }
 0x559   : > { %930 = dma.done.wait (%p834_p8), %s719_s10, 128  }
 0x55a   : > { %932 = vsyncadd (%p834_p8), %s719_s10, 4294967168  ;;  %p13_p9 = scmp.ge.s32.totalorder %s996_s18, 4   ;;  %s1310_s12 = smov %s939_s13 }
 0x55b   : > { %s1311_s13 = smov %s943_s14  ;;  %s1312_s14 = smov %s1007_s21 }
 0x55c   : > { %s1313_s15 = smov %s996_s18  ;;  %15 = sbr.rel (!%p13_p9) target bundleno = 3 (0x3), region = 67 }
 0x561   :  { %725 = vsyncpa [#allocation3], 1 }
 0x562   :  { %727 = vsyncpa [#allocation3 + $0x1], 1 }

</bundles_post_ra>
